<compile_context>
chip_gen: v6e
topology: v6e:2x2x1
jax: 0.10.0
libtpu: 0.0.40
codegen_flags: <defaults>
</compile_context>

<pallas_src>
import functools

import jax
import jax.numpy as jnp
from jax.experimental import pallas as pl
from jax.experimental.pallas import tpu as pltpu


def _round_up(n, m):
    return pl.cdiv(n, m) * m


def _bootstrapped_kernel(*refs, n_layers, head_num, compute_dtype):
    x_ref, idx_ref = refs[0], refs[1]
    wb_refs = refs[2:2 + 2 * n_layers]
    g_ref = refs[2 + 2 * n_layers]
    out_ref = refs[3 + 2 * n_layers]
    cd = compute_dtype

    # --- MLP hot path: chained matmuls (MXU, f32 accumulation) + f32 bias/ReLU (VPU) ---
    h = x_ref[...]                                                    # (TB, D_in) in cd
    for li in range(n_layers):
        w_ref, b_ref = wb_refs[2 * li], wb_refs[2 * li + 1]
        z = jnp.dot(h.astype(cd), w_ref[...],
                    preferred_element_type=jnp.float32) + b_ref[...]  # f32
        h = jnp.maximum(z, 0.0) if li < n_layers - 1 else z
    y = h                                                             # (TB, O*H) f32

    # --- per-row head select in the flat layout (no reshape / XLU relayout) ---
    out_dim = y.shape[-1]
    head_ids = jax.lax.broadcasted_iota(jnp.int32, (1, out_dim), 1) % head_num
    masked = jnp.where(head_ids == idx_ref[...], y, 0.0)              # (TB, O*H)
    # Group-sum with a constant 0/1 (O*H, O_pad) matrix on the MXU. Exactly one column
    # survives per head-group, so this is an exact select (up to the cd cast).
    out_ref[...] = jnp.dot(masked.astype(cd), g_ref[...],
                           preferred_element_type=jnp.float32).astype(out_ref.dtype)


def bootstrapped_net_forward(x, idx, params, *, head_num, origin_out,
                             batch_tile=1024, compute_dtype=jnp.bfloat16):
    """x: (B, D_in), idx: (B,) int in [0, head_num), params: list of (W[in,out], b[1,out])."""
    B, d_in = x.shape
    n_layers = len(params)
    out_dim = origin_out * head_num
    o_pad = _round_up(origin_out, 8)      # narrow output slab (was 128): far less HBM write

    # --- batch tiling: big tiles, balanced/even step count for v7x megacore ---
    ALIGN = 16                            # sublane alignment that also covers bf16 packing
    tb0 = min(batch_tile, _round_up(B, ALIGN))
    steps = pl.cdiv(B, tb0)
    if steps > 1 and steps % 2 == 1:
        steps += 1                        # even step count -> balanced across v7x's 2 TCs
    tb = _round_up(pl.cdiv(B, steps), ALIGN)

    x_c = x.astype(compute_dtype)
    idx2d = idx.reshape(B, 1).astype(jnp.int32)
    if B < tb:
        # Tiny batch (single partial block): pad explicitly (cheap). Padded rows are
        # discarded on the output write because out_shape keeps exactly B rows.
        pad = tb - B
        x_c = jnp.pad(x_c, ((0, pad), (0, 0)))
        idx2d = jnp.pad(idx2d, ((0, pad), (0, 0)))
    # For B >= tb we do NOT host-pad: the ragged last block's OOB input rows are garbage,
    # but every output row depends only on its own input row, and OOB output rows are
    # discarded by Pallas, so written rows are unaffected.
    rows_in = x_c.shape[0]
    grid = (pl.cdiv(rows_in, tb),)

    # Weights in compute dtype (bf16 MXU operands by default); biases stay f32.
    flat = []
    for w, b in params:
        flat.append(w.astype(compute_dtype))
        flat.append(b.astype(jnp.float32).reshape(1, -1))

    # Constant 0/1 grouping matrix: flat column c belongs to origin index c // head_num.
    gmat = (jnp.arange(out_dim, dtype=jnp.int32)[:, None] // head_num
            == jnp.arange(o_pad, dtype=jnp.int32)[None, :]).astype(compute_dtype)

    def resident(arr):
        return pl.BlockSpec(arr.shape, lambda i: (0, 0))   # VMEM-resident across all steps

    in_specs = [pl.BlockSpec((tb, d_in), lambda i: (i, 0)),
                pl.BlockSpec((tb, 1), lambda i: (i, 0))]
    in_specs += [resident(a) for a in flat]
    in_specs += [resident(gmat)]

    # VMEM budget: double-buffered batch tiles + resident weights + margin. Even tb=2048
    # needs < 10 MiB, far below v5e/v6e (128 MiB) and v7x (64 MiB) physical VMEM, so
    # tiles are never shrunk for VMEM headroom.
    itemsize = jnp.dtype(compute_dtype).itemsize
    tile_bytes = tb * d_in * itemsize + tb * 4 + tb * o_pad * 4
    weight_bytes = (sum(a.size * a.dtype.itemsize for a in flat)
                    + gmat.size * gmat.dtype.itemsize)
    vmem_bytes = int(min(max(2 * tile_bytes + weight_bytes + (4 << 20), 8 << 20), 32 << 20))

    kernel = functools.partial(_bootstrapped_kernel, n_layers=n_layers,
                               head_num=head_num, compute_dtype=compute_dtype)
    out = pl.pallas_call(
        kernel,
        out_shape=jax.ShapeDtypeStruct((B, o_pad), jnp.float32),
        grid=grid,
        in_specs=in_specs,
        out_specs=pl.BlockSpec((tb, o_pad), lambda i: (i, 0)),
        compiler_params=pltpu.CompilerParams(
            dimension_semantics=("parallel",),    # shards batch tiles across v7x's 2 TCs
            vmem_limit_bytes=vmem_bytes),
    )(x_c, idx2d, *flat, gmat)

    return out[:, :origin_out]


def _reference_forward(x, idx, params, *, head_num, origin_out):
    h = x
    for w, b in params[:-1]:
        h = jnp.maximum(h @ w + b, 0.0)
    w, b = params[-1]
    y = (h @ w + b).reshape(x.shape[0], origin_out, head_num)
    return jnp.take_along_axis(y, idx[:, None, None].astype(jnp.int32), axis=-1)[..., 0]


def _init_params(key, d_in, hidden_shapes, append_hidden_shapes, out_dim):
    """Deterministic synthetic init (basic_init-like for hidden, uniform_init for last)."""
    params = []
    dims = [d_in] + list(hidden_shapes) + list(append_hidden_shapes)
    for i in range(len(dims) - 1):
        key, kw = jax.random.split(key)
        w = jax.random.normal(kw, (dims[i], dims[i + 1]), jnp.float32) * 0.1
        b = jnp.zeros((1, dims[i + 1]), jnp.float32)
        params.append((w, b))
    key, kw, kb = jax.random.split(key, 3)
    w_last = jax.random.uniform(kw, (dims[-1], out_dim), jnp.float32,
                                minval=-3e-3, maxval=3e-3)
    b_last = jax.random.uniform(kb, (1, out_dim), jnp.float32,
                                minval=-3e-3, maxval=3e-3)
    params.append((w_last, b_last))
    return params


if __name__ == "__main__":
    # Small, module-consistent shapes.
    B, D_IN = 2, 16
    HIDDEN = [32, 32]          # base MLP hidden shapes
    APPEND = [32]              # append_hidden_shapes
    ORIGIN_OUT = 6             # origin_output_shape
    HEAD_NUM = 10              # head_num
    OUT_DIM = ORIGIN_OUT * HEAD_NUM

    key = jax.random.PRNGKey(0)
    key, kx, ki, kp = jax.random.split(key, 4)
    x = jax.random.normal(kx, (B, D_IN), jnp.float32)
    idx = jax.random.randint(ki, (B,), 0, HEAD_NUM, jnp.int32)
    params = _init_params(kp, D_IN, HIDDEN, APPEND, OUT_DIM)

    ref = _reference_forward(x, idx, params, head_num=HEAD_NUM, origin_out=ORIGIN_OUT)

    # f32 path: exact select -> tight tolerance.
    out_f32 = jax.block_until_ready(
        bootstrapped_net_forward(x, idx, params, head_num=HEAD_NUM,
                                 origin_out=ORIGIN_OUT, compute_dtype=jnp.float32))
    assert out_f32.shape == (B, ORIGIN_OUT)
    assert jnp.allclose(out_f32, ref, atol=1e-5, rtol=1e-5), (out_f32, ref)

    # Default bf16 MXU-operand path: loose tolerance (bf16 weight/activation rounding).
    out_bf16 = jax.block_until_ready(
        bootstrapped_net_forward(x, idx, params, head_num=HEAD_NUM, origin_out=ORIGIN_OUT))
    assert out_bf16.shape == (B, ORIGIN_OUT)
    assert jnp.allclose(out_bf16, ref, atol=5e-3, rtol=5e-2), (out_bf16, ref)

    # Larger batch: exercises the multi-step grid (even, balanced step count),
    # the ragged unpadded tail block, and the 'parallel' batch axis.
    B2 = 1037
    key, kx2, ki2 = jax.random.split(key, 3)
    x2 = jax.random.normal(kx2, (B2, D_IN), jnp.float32)
    idx2 = jax.random.randint(ki2, (B2,), 0, HEAD_NUM, jnp.int32)
    ref2 = _reference_forward(x2, idx2, params, head_num=HEAD_NUM, origin_out=ORIGIN_OUT)

    out2 = jax.block_until_ready(
        bootstrapped_net_forward(x2, idx2, params, head_num=HEAD_NUM, origin_out=ORIGIN_OUT))
    assert out2.shape == (B2, ORIGIN_OUT)
    assert jnp.allclose(out2, ref2, atol=5e-3, rtol=5e-2)

    out2_f32 = jax.block_until_ready(
        bootstrapped_net_forward(x2, idx2, params, head_num=HEAD_NUM,
                                 origin_out=ORIGIN_OUT, compute_dtype=jnp.float32))
    assert jnp.allclose(out2_f32, ref2, atol=1e-4, rtol=1e-4)

    print("KERNEL_OK")
</pallas_src>

<mosaic_0001>
module attributes {stable_mosaic.version = 11 : i64} {
  func.func @_bootstrapped_kernel(%arg0: i32, %arg1: memref<16x16xf32, #tpu.memory_space<vmem>>, %arg2: memref<16x1xi32, #tpu.memory_space<vmem>>, %arg3: memref<16x32xf32, #tpu.memory_space<vmem>>, %arg4: memref<1x32xf32, #tpu.memory_space<vmem>>, %arg5: memref<32x32xf32, #tpu.memory_space<vmem>>, %arg6: memref<1x32xf32, #tpu.memory_space<vmem>>, %arg7: memref<32x32xf32, #tpu.memory_space<vmem>>, %arg8: memref<1x32xf32, #tpu.memory_space<vmem>>, %arg9: memref<32x60xf32, #tpu.memory_space<vmem>>, %arg10: memref<1x60xf32, #tpu.memory_space<vmem>>, %arg11: memref<60x8xf32, #tpu.memory_space<vmem>>, %arg12: memref<16x8xf32, #tpu.memory_space<vmem>>) attributes {dimension_semantics = [#tpu.dimension_semantics<parallel>], iteration_bounds = array<i64: 1>, scalar_prefetch = 0 : i64, scratch_operands = 0 : i64, tpu.core_type = #tpu.core_type<tc>, window_params = [{transform_indices = @transform_0, window_bounds = array<i64: 16, 16>}, {transform_indices = @transform_1, window_bounds = array<i64: 16, 1>}, {pipeline_mode = #tpu.pipeline_mode<synchronous>, transform_indices = @transform_2, window_bounds = array<i64: 16, 32>}, {pipeline_mode = #tpu.pipeline_mode<synchronous>, transform_indices = @transform_3, window_bounds = array<i64: 1, 32>}, {pipeline_mode = #tpu.pipeline_mode<synchronous>, transform_indices = @transform_4, window_bounds = array<i64: 32, 32>}, {pipeline_mode = #tpu.pipeline_mode<synchronous>, transform_indices = @transform_5, window_bounds = array<i64: 1, 32>}, {pipeline_mode = #tpu.pipeline_mode<synchronous>, transform_indices = @transform_6, window_bounds = array<i64: 32, 32>}, {pipeline_mode = #tpu.pipeline_mode<synchronous>, transform_indices = @transform_7, window_bounds = array<i64: 1, 32>}, {pipeline_mode = #tpu.pipeline_mode<synchronous>, transform_indices = @transform_8, window_bounds = array<i64: 32, 60>}, {pipeline_mode = #tpu.pipeline_mode<synchronous>, transform_indices = @transform_9, window_bounds = array<i64: 1, 60>}, {pipeline_mode = #tpu.pipeline_mode<synchronous>, transform_indices = @transform_10, window_bounds = array<i64: 60, 8>}, {transform_indices = @transform_11, window_bounds = array<i64: 16, 8>}]} {
    %c0 = arith.constant 0 : index
    %c0_0 = arith.constant 0 : index
    %0 = vector.load %arg1[%c0, %c0_0] : memref<16x16xf32, #tpu.memory_space<vmem>>, vector<16x16xf32>
    %c0_1 = arith.constant 0 : index
    %c0_2 = arith.constant 0 : index
    %1 = vector.load %arg3[%c0_1, %c0_2] : memref<16x32xf32, #tpu.memory_space<vmem>>, vector<16x32xf32>
    %cst = arith.constant dense<0.000000e+00> : vector<16x32xf32>
    %2 = tpu.matmul %0, %1, %cst {dimension_numbers = #tpu.dot_dimension_numbers<[1], [0], [0], [1], [0, 0, 1, 1], [], []>} : vector<16x16xf32>, vector<16x32xf32>, vector<16x32xf32> -> vector<16x32xf32>
    %c0_3 = arith.constant 0 : index
    %c0_4 = arith.constant 0 : index
    %3 = vector.load %arg4[%c0_3, %c0_4] : memref<1x32xf32, #tpu.memory_space<vmem>>, vector<1x32xf32>
    %4 = vector.broadcast %3 : vector<1x32xf32> to vector<16x32xf32>
    %5 = arith.addf %2, %4 : vector<16x32xf32>
    %cst_5 = arith.constant 0.000000e+00 : f32
    %6 = vector.broadcast %cst_5 : f32 to vector<16x32xf32>
    %7 = arith.maximumf %5, %6 : vector<16x32xf32>
    %c0_6 = arith.constant 0 : index
    %c0_7 = arith.constant 0 : index
    %8 = vector.load %arg5[%c0_6, %c0_7] : memref<32x32xf32, #tpu.memory_space<vmem>>, vector<32x32xf32>
    %cst_8 = arith.constant dense<0.000000e+00> : vector<16x32xf32>
    %9 = tpu.matmul %7, %8, %cst_8 {dimension_numbers = #tpu.dot_dimension_numbers<[1], [0], [0], [1], [0, 0, 1, 1], [], []>} : vector<16x32xf32>, vector<32x32xf32>, vector<16x32xf32> -> vector<16x32xf32>
    %c0_9 = arith.constant 0 : index
    %c0_10 = arith.constant 0 : index
    %10 = vector.load %arg6[%c0_9, %c0_10] : memref<1x32xf32, #tpu.memory_space<vmem>>, vector<1x32xf32>
    %11 = vector.broadcast %10 : vector<1x32xf32> to vector<16x32xf32>
    %12 = arith.addf %9, %11 : vector<16x32xf32>
    %cst_11 = arith.constant 0.000000e+00 : f32
    %13 = vector.broadcast %cst_11 : f32 to vector<16x32xf32>
    %14 = arith.maximumf %12, %13 : vector<16x32xf32>
    %c0_12 = arith.constant 0 : index
    %c0_13 = arith.constant 0 : index
    %15 = vector.load %arg7[%c0_12, %c0_13] : memref<32x32xf32, #tpu.memory_space<vmem>>, vector<32x32xf32>
    %cst_14 = arith.constant dense<0.000000e+00> : vector<16x32xf32>
    %16 = tpu.matmul %14, %15, %cst_14 {dimension_numbers = #tpu.dot_dimension_numbers<[1], [0], [0], [1], [0, 0, 1, 1], [], []>} : vector<16x32xf32>, vector<32x32xf32>, vector<16x32xf32> -> vector<16x32xf32>
    %c0_15 = arith.constant 0 : index
    %c0_16 = arith.constant 0 : index
    %17 = vector.load %arg8[%c0_15, %c0_16] : memref<1x32xf32, #tpu.memory_space<vmem>>, vector<1x32xf32>
    %18 = vector.broadcast %17 : vector<1x32xf32> to vector<16x32xf32>
    %19 = arith.addf %16, %18 : vector<16x32xf32>
    %cst_17 = arith.constant 0.000000e+00 : f32
    %20 = vector.broadcast %cst_17 : f32 to vector<16x32xf32>
    %21 = arith.maximumf %19, %20 : vector<16x32xf32>
    %c0_18 = arith.constant 0 : index
    %c0_19 = arith.constant 0 : index
    %22 = vector.load %arg9[%c0_18, %c0_19] : memref<32x60xf32, #tpu.memory_space<vmem>>, vector<32x60xf32>
    %cst_20 = arith.constant dense<0.000000e+00> : vector<16x60xf32>
    %23 = tpu.matmul %21, %22, %cst_20 {dimension_numbers = #tpu.dot_dimension_numbers<[1], [0], [0], [1], [0, 0, 1, 1], [], []>} : vector<16x32xf32>, vector<32x60xf32>, vector<16x60xf32> -> vector<16x60xf32>
    %c0_21 = arith.constant 0 : index
    %c0_22 = arith.constant 0 : index
    %24 = vector.load %arg10[%c0_21, %c0_22] : memref<1x60xf32, #tpu.memory_space<vmem>>, vector<1x60xf32>
    %25 = vector.broadcast %24 : vector<1x60xf32> to vector<16x60xf32>
    %26 = arith.addf %23, %25 : vector<16x60xf32>
    %27 = tpu.iota {dimensions = array<i32: 1>} : vector<1x60xi32>
    %c10_i32 = arith.constant 10 : i32
    %c0_i32 = arith.constant 0 : i32
    %28 = arith.cmpi eq, %c10_i32, %c0_i32 : i32
    %c1_i32 = arith.constant 1 : i32
    %29 = arith.select %28, %c1_i32, %c10_i32 : i32
    %30 = vector.broadcast %29 : i32 to vector<1x60xi32>
    %31 = arith.remsi %27, %30 : vector<1x60xi32>
    %c0_i32_23 = arith.constant 0 : i32
    %32 = vector.broadcast %c0_i32_23 : i32 to vector<1x60xi32>
    %33 = arith.cmpi ne, %31, %32 : vector<1x60xi32>
    %c0_i32_24 = arith.constant 0 : i32
    %34 = vector.broadcast %c0_i32_24 : i32 to vector<1x60xi32>
    %35 = arith.cmpi slt, %31, %34 : vector<1x60xi32>
    %c0_i32_25 = arith.constant 0 : i32
    %36 = arith.cmpi slt, %29, %c0_i32_25 : i32
    %37 = vector.broadcast %36 : i1 to vector<1x60xi1>
    %38 = vector.broadcast %37 : vector<1x60xi1> to vector<1x60xi1>
    %39 = arith.xori %35, %38 : vector<1x60xi1>
    %40 = arith.andi %39, %33 : vector<1x60xi1>
    %41 = vector.broadcast %29 : i32 to vector<1x60xi32>
    %42 = arith.addi %31, %41 : vector<1x60xi32>
    %43 = arith.select %40, %42, %31 : vector<1x60xi1>, vector<1x60xi32>
    %c0_26 = arith.constant 0 : index
    %c0_27 = arith.constant 0 : index
    %44 = vector.load %arg2[%c0_26, %c0_27] : memref<16x1xi32, #tpu.memory_space<vmem>>, vector<16x1xi32>
    %45 = vector.broadcast %43 : vector<1x60xi32> to vector<16x60xi32>
    %46 = vector.broadcast %44 : vector<16x1xi32> to vector<16x60xi32>
    %47 = arith.cmpi eq, %45, %46 : vector<16x60xi32>
    %cst_28 = arith.constant 0.000000e+00 : f32
    %48 = vector.broadcast %cst_28 : f32 to vector<16x60xf32>
    %49 = arith.select %47, %26, %48 : vector<16x60xi1>, vector<16x60xf32>
    %c0_29 = arith.constant 0 : index
    %c0_30 = arith.constant 0 : index
    %50 = vector.load %arg11[%c0_29, %c0_30] : memref<60x8xf32, #tpu.memory_space<vmem>>, vector<60x8xf32>
    %cst_31 = arith.constant dense<0.000000e+00> : vector<16x8xf32>
    %51 = tpu.matmul %49, %50, %cst_31 {dimension_numbers = #tpu.dot_dimension_numbers<[1], [0], [0], [1], [0, 0, 1, 1], [], []>} : vector<16x60xf32>, vector<60x8xf32>, vector<16x8xf32> -> vector<16x8xf32>
    %c0_32 = arith.constant 0 : index
    %c0_33 = arith.constant 0 : index
    %52 = vector.load %arg12[%c0_32, %c0_33] : memref<16x8xf32, #tpu.memory_space<vmem>>, vector<16x8xf32>
    tpu.vector_store %arg12[%c0_32, %c0_33], %51 {strides = array<i32>} : memref<16x8xf32, #tpu.memory_space<vmem>>, vector<16x8xf32>,
    return
  }
  func.func @transform_0(%arg0: i32) -> (i32, i32) {
    %c0_i32 = arith.constant 0 : i32
    %c0_i32_0 = arith.constant 0 : i32
    return %arg0, %c0_i32 : i32, i32
  }
  func.func @transform_1(%arg0: i32) -> (i32, i32) {
    %c0_i32 = arith.constant 0 : i32
    %c0_i32_0 = arith.constant 0 : i32
    return %arg0, %c0_i32 : i32, i32
  }
  func.func @transform_2(%arg0: i32) -> (i32, i32) {
    %c0_i32 = arith.constant 0 : i32
    %c0_i32_0 = arith.constant 0 : i32
    %c0_i32_1 = arith.constant 0 : i32
    return %c0_i32, %c0_i32_0 : i32, i32
  }
  func.func @transform_3(%arg0: i32) -> (i32, i32) {
    %c0_i32 = arith.constant 0 : i32
    %c0_i32_0 = arith.constant 0 : i32
    %c0_i32_1 = arith.constant 0 : i32
    return %c0_i32, %c0_i32_0 : i32, i32
  }
  func.func @transform_4(%arg0: i32) -> (i32, i32) {
    %c0_i32 = arith.constant 0 : i32
    %c0_i32_0 = arith.constant 0 : i32
    %c0_i32_1 = arith.constant 0 : i32
    return %c0_i32, %c0_i32_0 : i32, i32
  }
  func.func @transform_5(%arg0: i32) -> (i32, i32) {
    %c0_i32 = arith.constant 0 : i32
    %c0_i32_0 = arith.constant 0 : i32
    %c0_i32_1 = arith.constant 0 : i32
    return %c0_i32, %c0_i32_0 : i32, i32
  }
  func.func @transform_6(%arg0: i32) -> (i32, i32) {
    %c0_i32 = arith.constant 0 : i32
    %c0_i32_0 = arith.constant 0 : i32
    %c0_i32_1 = arith.constant 0 : i32
    return %c0_i32, %c0_i32_0 : i32, i32
  }
  func.func @transform_7(%arg0: i32) -> (i32, i32) {
    %c0_i32 = arith.constant 0 : i32
    %c0_i32_0 = arith.constant 0 : i32
    %c0_i32_1 = arith.constant 0 : i32
    return %c0_i32, %c0_i32_0 : i32, i32
  }
  func.func @transform_8(%arg0: i32) -> (i32, i32) {
    %c0_i32 = arith.constant 0 : i32
    %c0_i32_0 = arith.constant 0 : i32
    %c0_i32_1 = arith.constant 0 : i32
    return %c0_i32, %c0_i32_0 : i32, i32
  }
  func.func @transform_9(%arg0: i32) -> (i32, i32) {
    %c0_i32 = arith.constant 0 : i32
    %c0_i32_0 = arith.constant 0 : i32
    %c0_i32_1 = arith.constant 0 : i32
    return %c0_i32, %c0_i32_0 : i32, i32
  }
  func.func @transform_10(%arg0: i32) -> (i32, i32) {
    %c0_i32 = arith.constant 0 : i32
    %c0_i32_0 = arith.constant 0 : i32
    %c0_i32_1 = arith.constant 0 : i32
    return %c0_i32, %c0_i32_0 : i32, i32
  }
  func.func @transform_11(%arg0: i32) -> (i32, i32) {
    %c0_i32 = arith.constant 0 : i32
    %c0_i32_0 = arith.constant 0 : i32
    return %arg0, %c0_i32 : i32, i32
  }
}

</mosaic_0001>

<bundles_post_ra>
// kernel: tpu_custom_call.1
= control target key start
LH: loop header
LB: loop body
LE: loop exit
PB: predicated region body
PF: predicated region fallthrough
CT: control target
= control target key end

     0   :  { %16 = vsyncpa [#allocation3], 0  ;;  %s1039_s0 = inlined_call_operand.hbm [shape: f32[16,16], index: 0, kind: input, shape index: {}]   ;;  %s1040_s1 = inlined_call_operand.vmem [shape: s32[16,1], index: 1, kind: input, shape index: {}]   ;;  %s1041_s2 = inlined_call_operand.hbm [shape: f32[16,32], index: 2, kind: input, shape index: {}]   ;;  %s1042_s3 = inlined_call_operand.hbm [shape: f32[1,32], index: 3, kind: input, shape index: {}]   ;;  %s1043_s4 = inlined_call_operand.vmem [shape: f32[32,32], index: 4, kind: input, shape index: {}]   ;;  %s1044_s5 = inlined_call_operand.vmem [shape: f32[1,32], index: 5, kind: input, shape index: {}]   ;;  %s1045_s6 = inlined_call_operand.vmem [shape: f32[32,32], index: 6, kind: input, shape index: {}]   ;;  %s1046_s7 = inlined_call_operand.hbm [shape: f32[1,32], index: 7, kind: input, shape index: {}]   ;;  %s1047_s8 = inlined_call_operand.vmem [shape: f32[32,60], index: 8, kind: input, shape index: {}]   ;;  %s1048_s9 = inlined_call_operand.hbm [shape: f32[1,60], index: 9, kind: input, shape index: {}]   ;;  %s1049_s10 = inlined_call_operand.vmem [shape: f32[60,8], index: 10, kind: input, shape index: {}]   ;;  %s1050_s11 = inlined_call_operand.hbm [shape: f32[2,8], index: 11, kind: output, shape index: {}]  }
   0x1   :  { %17 = vsyncpa [#allocation6], 0 }
   0x2   :  { %18 = vsyncpa [#allocation9], 0 }
   0x3   :  { %19 = vsyncpa [#allocation4], 0  ;;  %s871_s17 = smov [#allocation5]   ;;  %s872_s19 = smov [#allocation8]  }
   0x4   :  { %s39_s18 = sshll.u32 %s871_s17, 4  ;;  %s68_s20 = sshll.u32 %s872_s19, 4  ;;  %s40_s18 = int_to_ptr.vmem [resolvable:$true] %s39_s18  ;;  %s69_s20 = int_to_ptr.vmem [resolvable:$true] %s68_s20 }
   0x5   :  { %s751_s21 = scalar_lea.vmem %s40_s18, 256  ;;  %p756_p1 = scmp.lt.s32.totalorder %s40_s18, %s40_s18 }
   0x6   :  { %p752_p0 = scmp.ne.s32.totalorder %s40_s18, %s751_s21  ;;  %p757_p2 = scmp.lt.s32.totalorder %s751_s21, %s751_s21 }
   0x8   :  { %p758_p3 = por %p757_p2, %p756_p1 }
   0xa   :  { %p759_p4 = pnand %p758_p3, %p752_p0 }
   0xc   :  { %762 = shalt.err (!%p759_p4)
}
   0xd   :  { %s873_s22 = smov 128   ;;  %s874_s23 = smov 8  }
   0xe   :  { %45 = dma.hbm_to_vmem [thread:$0]  %s1041_s2, 256, %s40_s18, [#allocation6], %s873_s22, %s873_s22, %s874_s23  }
   0xf   :  { %s771_s26 = scalar_lea.vmem %s69_s20, 16  ;;  %s775_s27 = scalar_lea.vmem %s69_s20, 32 }
  0x10   :  { %p772_p5 = scmp.ne.s32.totalorder %s69_s20, %s771_s26  ;;  %p776_p6 = scmp.lt.s32.totalorder %s69_s20, %s69_s20 }
  0x11   :  { %p777_p7 = scmp.lt.s32.totalorder %s775_s27, %s771_s26 }
  0x13   :  { %p778_p8 = por %p777_p7, %p776_p6 }
  0x15   :  { %p779_p9 = pnand %p778_p8, %p772_p5 }
  0x17   :  { %782 = shalt.err (!%p779_p9)
}
  0x18   :  { %71 = dma.hbm_to_vmem [thread:$0]  %s1046_s7, 16, %s69_s20, [#allocation9]  }
  0x19   :  { %s875_s30 = smov [#allocation2]   ;;  %s876_s13 = smov [#allocation7]  }
  0x1a   :  { %s25_s12 = sshll.u32 %s875_s30, 4  ;;  %s52_s14 = sshll.u32 %s876_s13, 4  ;;  %s26_s12 = int_to_ptr.vmem [resolvable:$true] %s25_s12  ;;  %s53_s14 = int_to_ptr.vmem [resolvable:$true] %s52_s14 }
  0x1b   :  { %s791_s15 = scalar_lea.vmem %s26_s12, 256  ;;  %p796_p11 = scmp.lt.s32.totalorder %s26_s12, %s26_s12 }
  0x1c   :  { %p792_p10 = scmp.ne.s32.totalorder %s26_s12, %s791_s15  ;;  %p797_p12 = scmp.lt.s32.totalorder %s791_s15, %s791_s15 }
  0x1e   :  { %p798_p13 = por %p797_p12, %p796_p11 }
  0x20   :  { %p799_p0 = pnand %p798_p13, %p792_p10 }
  0x22   :  { %802 = shalt.err (!%p799_p0)
}
  0x23   :  { %31 = dma.hbm_to_vmem [thread:$0]  %s1039_s0, 256, %s26_s12, [#allocation3], %s873_s22, %s873_s22, %s874_s23  }
  0x24   :  { %s811_s17 = scalar_lea.vmem %s53_s14, 16  ;;  %s815_s7 = scalar_lea.vmem %s53_s14, 32 }
  0x25   :  { %p812_p1 = scmp.ne.s32.totalorder %s53_s14, %s811_s17  ;;  %p816_p2 = scmp.lt.s32.totalorder %s53_s14, %s53_s14 }
  0x26   :  { %p817_p3 = scmp.lt.s32.totalorder %s815_s7, %s811_s17 }
  0x28   :  { %p818_p4 = por %p817_p3, %p816_p2 }
  0x2a   :  { %p819_p5 = pnand %p818_p4, %p812_p1 }
  0x2c   :  { %822 = shalt.err (!%p819_p5)
}
  0x2d   :  { %55 = dma.hbm_to_vmem [thread:$0]  %s1042_s3, 16, %s53_s14, [#allocation6]  }
  0x2e   :  { %s877_s20 = smov [#allocation10]  }
  0x2f   :  { %s80_s21 = sshll.u32 %s877_s20, 4  ;;  %s81_s21 = int_to_ptr.vmem [resolvable:$true] %s80_s21 }
  0x30   :  { %s831_s24 = scalar_lea.vmem %s81_s21, 16  ;;  %s835_s25 = scalar_lea.vmem %s81_s21, 32 }
  0x31   :  { %p832_p6 = scmp.ne.s32.totalorder %s81_s21, %s831_s24  ;;  %p836_p7 = scmp.lt.s32.totalorder %s81_s21, %s81_s21 }
  0x32   :  { %p837_p8 = scmp.lt.s32.totalorder %s835_s25, %s831_s24 }
  0x34   :  { %p838_p9 = por %p837_p8, %p836_p7 }
  0x36   :  { %p839_p10 = pnand %p838_p9, %p832_p6 }
  0x38   :  { %842 = shalt.err (!%p839_p10)
}
  0x39   :  { %83 = dma.hbm_to_vmem [thread:$0]  %s1048_s9, 16, %s81_s21, [#allocation9]  }
  0x3a   :  { %863 = dma.done.wait [#allocation3], 256  }
  0x3b   :  { %864 = vsyncadd [#allocation3], 4294967040 }
  0x3c   :  { %865 = dma.done.wait [#allocation6], 272  }
  0x3d   :  { %866 = vsyncadd [#allocation6], 4294967024 }
  0x3e   :  { %867 = dma.done.wait [#allocation9], 32  }
  0x3f   :  { %868 = vsyncadd [#allocation9], 4294967264  ;;  %vm112_vm0 = vcmask 130048   ;;  %v104_v0 = vld [vmem:[#allocation5 + $0x8] sm:$0xff]  ;;  %v103_v1 = vld [vmem:[#allocation5] sm:$0xff]  ;;  %vm207_vm1 = vcmask 261120   ;;  %v477_v48 = vlaneseq }
  0x40   :  { %v101_v2 = vld [vmem:[#allocation2] sm:$0xff]  ;;  %670 = vmatprep.subr.mxu1 %v104_v0  ;;  %v102_v3 = vld [vmem:[#allocation2 + $0x8] sm:$0xff]  ;;  %v199_v4 = vld [vmem:[%s1043_s4 + $0x18] sm:$0xff]  ;;  %vm522_vm2 = vcmask 1043456   ;;  %v878_v32 = vmov 0   ;;  %vm515_vm7 = vcmask 490496  }
  0x41   :  { %674 = vmatprep.mubr.msk.f32.mxu1 %vm112_vm0, %v101_v2  ;;  %671 = vmatpush3.msra.mxu1 %v104_v0  ;;  %v198_v5 = vld [vmem:[%s1043_s4 + $0x10] sm:$0xff]  ;;  %v197_v6 = vld [vmem:[%s1043_s4 + $0x8] sm:$0xff]  ;;  %v196_v7 = vld [vmem:[%s1043_s4] sm:$0xff]  ;;  %v478_v49 = vand.u32 127, %v477_v48  ;;  %vm601_vm9 = vcmask 64512  }
  0x42   :  { %672 = vmatprep.subr.mxu1 %v103_v1  ;;  %v623_v8 = vld [vmem:[#allocation7] ss:$0 sm:$0xff]  ;;  %v294_v15 = vld [vmem:[%s1045_s6 + $0x18] sm:$0xff]  ;;  %v293_v16 = vld [vmem:[%s1045_s6 + $0x10] sm:$0xff]  ;;  %742 = vset.pattern.permute.xlu0 %v878_v32 }
  0x43   :  { %673 = vmatpush3.msra.mxu1 %v103_v1  ;;  %688 = vmatprep.subr.mxu0 %v294_v15  ;;  %v292_v17 = vld [vmem:[%s1045_s6 + $0x8] sm:$0xff]  ;;  %v291_v18 = vld [vmem:[%s1045_s6] sm:$0xff]  ;;  %v388_v26 = vld [vmem:[%s1047_s8 + $0x18] sm:$0xff]  ;;  %v1032_v50 = vmul.u32.u64.low 3435973837, %v478_v49  ;;  %v1033_v51 = vmul.u32.u64.high 3435973837, %v478_v49, %v1032_v50 }
  0x44   :  { %675 = vmatmul.mubr.msk.f32.vlgmr.msra.gmra.mxu1 %vm112_vm0, %v102_v3  ;;  %677 = vmatprep.subr.mxu1 %v199_v4  ;;  %v626_v19 = vld [vmem:[%s1044_s5] ss:$0 sm:$0xff]  ;;  %v387_v27 = vld [vmem:[%s1047_s8 + $0x10] sm:$0xff]  ;;  %v386_v28 = vld [vmem:[%s1047_s8 + $0x8] sm:$0xff] }
  0x45   :  { %678 = vmatpush3.msra.mxu1 %v199_v4  ;;  %689 = vmatpush3.msra.mxu0 %v294_v15  ;;  %v385_v29 = vld [vmem:[%s1047_s8] sm:$0xff]  ;;  %v514_v31 = vld [vmem:[%s1049_s10 + $0x38] sm:$0xf]  ;;  %v513_v33 = vld [vmem:[%s1049_s10 + $0x30] sm:$0xff]  ;;  %v485_v52 = vshrl.u32 %v1033_v51, 3 }
  0x46   :  { %679 = vmatprep.subr.mxu1 %v198_v5  ;;  %690 = vmatprep.subr.mxu0 %v293_v16  ;;  %v495_v30 = vld [vmem:[%s1040_s1] sm:$0xff]  ;;  %v512_v34 = vld [vmem:[%s1049_s10 + $0x28] sm:$0xff]  ;;  %v510_v37 = vld [vmem:[%s1049_s10 + $0x18] sm:$0xff] }
  0x47   :  { %680 = vmatpush3.msra.mxu1 %v198_v5  ;;  %691 = vmatpush3.msra.mxu0 %v293_v16  ;;  %v496_v35 = vld [vmem:[%s1040_s1 + $0x8] sm:$0xff]  ;;  %v511_v36 = vld [vmem:[%s1049_s10 + $0x20] sm:$0xff]  ;;  %v509_v45 = vld [vmem:[%s1049_s10 + $0x10] sm:$0xff]  ;;  %v486_v53 = vmul.u32 10, %v485_v52 }
  0x48   :  { %681 = vmatprep.subr.mxu1 %v197_v6  ;;  %692 = vmatprep.subr.mxu0 %v292_v17  ;;  %v629_v38 = vld [vmem:[#allocation8] ss:$0 sm:$0xff]  ;;  %v508_v46 = vld [vmem:[%s1049_s10 + $0x8] sm:$0xff]  ;;  %v632_v57 = vld [vmem:[#allocation10] ss:$0 sm:$0xff] }
  0x49   :  { %682 = vmatpush3.msra.mxu1 %v197_v6  ;;  %693 = vmatpush3.msra.mxu0 %v292_v17  ;;  %v507_v47 = vld [vmem:[%s1049_s10] sm:$0xff]  ;;  %v487_v54 = vsub.s32 %v478_v49, %v486_v53 }
  0x4a   :  { %683 = vmatprep.subr.mxu1 %v196_v7  ;;  %694 = vmatprep.subr.mxu0 %v291_v18 }
  0x4b   :  { %684 = vmatpush3.msra.mxu1 %v196_v7  ;;  %695 = vmatpush3.msra.mxu0 %v291_v18  ;;  %vm490_vm3 = vcmp.ne.s32.totalorder %v487_v54, 0  ;;  %vm491_vm4 = vcmp.lt.s32.totalorder %v487_v54, 0  ;;  %v493_v56 = vadd.s32 10, %v487_v54 }
  0x4c   :  { %699 = vmatprep.subr.mxu1 %v388_v26  ;;  %710 = vmatprep.subr.msk.mxu0 %vm522_vm2, %v514_v31  ;;  %vm492_vm5 = vmand %vm491_vm4, %vm490_vm3 }
  0x4d   :  { %498 = vperm.xlu0 %742, %v495_v30   ;;  %v494_v58 = vsel %vm492_vm5, %v493_v56, %v487_v54 }
  0x51   :  { %501 = vperm.xlu0 %742, %v496_v35  }
  0xc8   :  { %v499_v55 = vpop.permute.xlu0 %498 }
  0xc9   :  { %vm503_vm8 = vcmp.eq.s32.totalorder %v494_v58, %v499_v55 }
  0xcc   :  { %v502_v59 = vpop.permute.xlu0 %501 }
  0xcd   :  { %vm504_vm6 = vcmp.eq.s32.totalorder %v494_v58, %v502_v59 }
 0x104   :  { %v676_v9 = vpop.f32.mrf.mxu1 }
 0x105   :  { %v191_v10 = vadd.f32 %v676_v9, %v623_v8 }
 0x106   :  { %v185_v11 = vpop.f32.mrf.mxu1 }
 0x107   :  { %v186_v12 = vadd.f32 %v623_v8, %v185_v11  ;;  %v195_v14 = vmax.f32 %v191_v10, 0.0 }
 0x109   :  { %v194_v13 = vmax.f32 %v186_v12, 0.0 }
 0x10b   :  { %685 = vmatprep.mubr.msk.f32.mxu1 %vm207_vm1, %v194_v13 }
 0x10c   :  { %686 = vmatmul.mubr.msk.f32.vlgmr.msra.gmra.mxu1 %vm207_vm1, %v195_v14 }
 0x10d   :  { %700 = vmatpush3.msra.mxu1 %v388_v26 }
 0x10e   :  { %701 = vmatprep.subr.mxu1 %v387_v27 }
 0x10f   :  { %702 = vmatpush3.msra.mxu1 %v387_v27 }
 0x110   :  { %703 = vmatprep.subr.mxu1 %v386_v28 }
 0x111   :  { %704 = vmatpush3.msra.mxu1 %v386_v28 }
 0x112   :  { %705 = vmatprep.subr.mxu1 %v385_v29 }
 0x113   :  { %706 = vmatpush3.msra.mxu1 %v385_v29 }
 0x1cc   :  { %v687_v20 = vpop.f32.mrf.mxu1 }
 0x1cd   :  { %v286_v21 = vadd.f32 %v687_v20, %v626_v19 }
 0x1ce   :  { %v280_v22 = vpop.f32.mrf.mxu1 }
 0x1cf   :  { %v281_v23 = vadd.f32 %v626_v19, %v280_v22  ;;  %v290_v25 = vmax.f32 %v286_v21, 0.0 }
 0x1d1   :  { %v289_v24 = vmax.f32 %v281_v23, 0.0 }
 0x1d3   :  { %696 = vmatprep.mubr.msk.f32.mxu0 %vm207_vm1, %v289_v24 }
 0x1d4   :  { %697 = vmatmul.mubr.msk.f32.vlgmr.msra.gmra.mxu0 %vm207_vm1, %v290_v25 }
 0x1d5   :  { %711 = vmatpush3.msk.msra.mxu0 %vm522_vm2, %v514_v31 }
 0x1d6   :  { %712 = vmatprep.subr.mxu0 %v513_v33 }
 0x1d7   :  { %713 = vmatpush3.msra.mxu0 %v513_v33 }
 0x1d8   :  { %714 = vmatprep.subr.mxu0 %v512_v34 }
 0x1d9   :  { %715 = vmatpush3.msra.mxu0 %v512_v34 }
 0x1da   :  { %716 = vmatprep.subr.mxu0 %v511_v36 }
 0x1db   :  { %717 = vmatpush3.msra.mxu0 %v511_v36 }
 0x1dc   :  { %718 = vmatprep.subr.mxu0 %v510_v37 }
 0x1dd   :  { %719 = vmatpush3.msra.mxu0 %v510_v37 }
 0x1de   :  { %720 = vmatprep.subr.mxu0 %v509_v45 }
 0x1df   :  { %721 = vmatpush3.msra.mxu0 %v509_v45 }
 0x1e0   :  { %722 = vmatprep.subr.mxu0 %v508_v46 }
 0x1e1   :  { %723 = vmatpush3.msra.mxu0 %v508_v46 }
 0x1e2   :  { %724 = vmatprep.subr.mxu0 %v507_v47 }
 0x1e3   :  { %725 = vmatpush3.msra.mxu0 %v507_v47 }
 0x294   :  { %v698_v39 = vpop.f32.mrf.mxu0 }
 0x295   :  { %v380_v40 = vadd.f32 %v698_v39, %v629_v38 }
 0x296   :  { %v374_v41 = vpop.f32.mrf.mxu0 }
 0x297   :  { %v375_v42 = vadd.f32 %v629_v38, %v374_v41  ;;  %v384_v44 = vmax.f32 %v380_v40, 0.0 }
 0x299   :  { %v383_v43 = vmax.f32 %v375_v42, 0.0 }
 0x29b   :  { %707 = vmatprep.mubr.msk.f32.mxu1 %vm207_vm1, %v383_v43 }
 0x29c   :  { %708 = vmatmul.mubr.msk.f32.vlgmr.msra.gmra.mxu1 %vm207_vm1, %v384_v44 }
 0x35c   :  { %v709_v60 = vpop.f32.mrf.mxu1 }
 0x35d   :  { %v474_v61 = vadd.f32 %v709_v60, %v632_v57 }
 0x35e   :  { %v468_v62 = vpop.f32.mrf.mxu1 }
 0x35f   :  { %v469_v63 = vadd.f32 %v632_v57, %v468_v62  ;;  %v506_v1 = vsel %vm504_vm6, %v474_v61, 0.0 }
 0x361   :  { %v505_v0 = vsel %vm503_vm8, %v469_v63, 0.0 }
 0x362   :  { %726 = vmatprep.mubr.msk.f32.mxu0 %vm515_vm7, %v505_v0 }
 0x363   :  { %727 = vmatmul.mubr.msk.f32.vlgmr.msra.gmra.mxu0 %vm515_vm7, %v506_v1 }
 0x423   :  { %v728_v2 = vpop.f32.mrf.mxu0 }
 0x424   :  { %603 = vst.msk [vmem:[#allocation11 + $0x8] sm:$0xff] %vm601_vm9, %v728_v2 }
 0x425   :  { %v592_v3 = vpop.f32.mrf.mxu0 }
 0x426   :  { %602 = vst.msk [vmem:[#allocation11] sm:$0xff] %vm601_vm9, %v592_v3 }
 0x427   :  { %608 = vsyncadd [#allocation4], 224  ;;  %s879_s10 = smov [#allocation11]  }
 0x428   :  { %s609_s18 = sshll.u32 %s879_s10, 4  ;;  %s610_s18 = int_to_ptr.vmem [resolvable:$true] %s609_s18 }
 0x429   :  { %s843_s19 = scalar_lea.vmem %s610_s18, 32  ;;  %s847_s20 = scalar_lea.vmem %s610_s18, 256 }
 0x42a   :  { %p844_p11 = scmp.ne.s32.totalorder %s610_s18, %s843_s19  ;;  %p848_p12 = scmp.lt.s32.totalorder %s610_s18, %s610_s18 }
 0x42b   :  { %p849_p13 = scmp.lt.s32.totalorder %s847_s20, %s843_s19 }
 0x42d   :  { %p850_p0 = por %p849_p13, %p848_p12 }
 0x42f   :  { %p851_p1 = pnand %p850_p0, %p844_p11 }
 0x431   :  { %854 = shalt.err (!%p851_p1)
}
 0x432   :  { %s880_s6 = smov 32   ;;  %s881_s21 = smov 2  }
 0x433   :  { %615 = dma.vmem_to_hbm [thread:$0]  %s610_s18, 32, %s1050_s11, [#allocation4], %s880_s6, %s880_s6, %s881_s21  }
 0x434   :  { %869 = dma.done.wait [#allocation4], 256  }
 0x435   :  { %870 = vsyncadd [#allocation4], 4294967040 }
 0x436   :  { %619 = vsyncpa [#allocation3], 1 }
 0x437   :  { %620 = vsyncpa [#allocation6], 1 }
 0x438   :  { %621 = vsyncpa [#allocation9], 1 }
 0x439   :  { %622 = vsyncpa [#allocation4], 1 }

</bundles_post_ra>
